<compile_context>
chip_gen: v6e
topology: v6e:2x2x1
jax: 0.10.0
libtpu: 0.0.40
codegen_flags: <defaults>
</compile_context>

<pallas_src>
import jax
import jax.numpy as jnp
from jax.experimental import pallas as pl
from jax.experimental.pallas import tpu as pltpu


def _round_up(x, m):
    return ((x + m - 1) // m) * m


def _cdiv(a, b):
    return (a + b - 1) // b


def _pick_lane_tile(n, target=2048):
    """Largest multiple of 128 dividing n, <= target, preferring >= 16 rows."""
    cands = [t for t in range(128, min(n, target) + 1, 128) if n % t == 0]
    if not cands:
        return None
    good = [t for t in cands if n // t >= 16]
    return max(good) if good else max(cands)


def _pick_k_tile(k_p, target=512):
    """Largest multiple of 128 <= target that divides k_p (k_p % 128 == 0)."""
    t = (min(target, k_p) // 128) * 128
    while t > 128 and k_p % t != 0:
        t -= 128
    return max(t, 128)


def _choose_tr(rows, tc, itemsize=4, target_bytes=2 << 20, min_tiles=2):
    """Row-tile: ~target_bytes per block, >= min_tiles tiles for megacore."""
    tr = max(8, (target_bytes // (itemsize * tc)) // 8 * 8)
    tr = min(tr, _round_up(rows, 8))
    while tr > 8 and _cdiv(rows, tr) < min_tiles:
        tr = max(8, (tr // 2) // 8 * 8)
    return tr


# ----------------------------- forward kernel ------------------------------
def _linear_kernel(x_ref, w_ref, b_ref, o_ref, acc_ref):
    # Canonical [M,K]x[K,N] contraction (weight pre-transposed once at init),
    # accumulated over the K grid axis in an f32 VMEM scratch.
    k = pl.program_id(2)

    @pl.when(k == 0)
    def _():
        acc_ref[...] = jnp.zeros_like(acc_ref)

    acc_ref[...] += jnp.dot(x_ref[...], w_ref[...],
                            preferred_element_type=jnp.float32)

    @pl.when(k == pl.num_programs(2) - 1)
    def _():
        o_ref[...] = (acc_ref[...] + b_ref[...]).astype(o_ref.dtype)


def linear_forward(x, w_t, b_row, d_out, *, tm=256, tn=256, tk=512,
                   compute_dtype=None):
    """x: [B, Din], w_t: [Din_p, Dout_p] (pre-padded, pre-transposed),
    b_row: [1, Dout_p] -> [B, d_out]."""
    B, Din = x.shape
    K_p, N_p = w_t.shape
    out_dtype = x.dtype

    # Per-call cost is only the pad of x's contraction dim (weight K is
    # zero-padded at init, so the extra K terms contribute exactly 0).
    if Din != K_p:
        x = jnp.pad(x, ((0, 0), (0, K_p - Din)))
    if compute_dtype is not None and x.dtype != compute_dtype:
        x = x.astype(compute_dtype)

    tm = min(tm, _round_up(B, 8))
    tn = min(tn, N_p)               # N_p is a multiple of 128
    tk = _pick_k_tile(K_p, tk)      # must divide K_p exactly (K overhang unsafe)
    grid = (_cdiv(B, tm), _cdiv(N_p, tn), K_p // tk)

    ib = jnp.dtype(x.dtype).itemsize
    ob = jnp.dtype(out_dtype).itemsize
    need = 2 * (tm * tk + tk * tn + tn) * ib + 2 * tm * tn * ob + tm * tn * 4
    vmem_limit = int(min(max(int(need * 1.5), 16 << 20), 64 << 20))

    out = pl.pallas_call(
        _linear_kernel,
        out_shape=jax.ShapeDtypeStruct((B, N_p), out_dtype),
        grid_spec=pltpu.PrefetchScalarGridSpec(
            num_scalar_prefetch=0,
            grid=grid,
            in_specs=[
                pl.BlockSpec((tm, tk), lambda i, j, k: (i, k)),
                pl.BlockSpec((tk, tn), lambda i, j, k: (k, j)),
                pl.BlockSpec((1, tn), lambda i, j, k: (0, j)),
            ],
            out_specs=pl.BlockSpec((tm, tn), lambda i, j, k: (i, j)),
            scratch_shapes=[pltpu.VMEM((tm, tn), jnp.float32)],
        ),
        compiler_params=pltpu.CompilerParams(
            dimension_semantics=("parallel", "parallel", "arbitrary"),
            vmem_limit_bytes=vmem_limit,
        ),
    )(x, w_t, b_row)
    return out[:, :d_out]


# ------------------------ gradient "all-reduce" kernel ----------------------
def _make_allreduce_kernel(inv_world):
    def kernel(g_ref, o_ref, acc_ref):
        w = pl.program_id(1)
        g = g_ref[...].astype(jnp.float32)   # f32 accumulation even for bf16 grads

        @pl.when(w == 0)
        def _():
            acc_ref[...] = g                 # direct write: no zero-fill pass

        @pl.when(w != 0)
        def _():
            acc_ref[...] += g

        @pl.when(w == pl.num_programs(1) - 1)
        def _():
            # 1/world folded into the single final store (mean over replicas).
            o_ref[...] = (acc_ref[...] * inv_world).astype(o_ref.dtype)

    return kernel


def allreduce_mean(grads_stacked, *, target_tc=2048, target_block_bytes=2 << 20):
    """grads_stacked: [world, R, C] -> [R, C] (mean over world)."""
    W, R, C = grads_stacked.shape
    N = R * C
    itemsize = jnp.dtype(grads_stacked.dtype).itemsize

    tc = _pick_lane_tile(N, target_tc)
    if tc is not None:
        # Free reshape to a lane-dense [world, rows, tc] view — no HBM copy.
        rows = N // tc
        g_view = grads_stacked.reshape(W, rows, tc)
        n_pad = N
    else:
        # Ragged total size: rare fallback, one padded copy.
        tc = min(512, _round_up(N, 128))
        n_pad = _round_up(N, tc)
        rows = n_pad // tc
        g_view = jnp.pad(grads_stacked.reshape(W, N),
                         ((0, 0), (0, n_pad - N))).reshape(W, rows, tc)

    tr = _choose_tr(rows, tc, itemsize, target_block_bytes)
    grid = (_cdiv(rows, tr), W)  # world/reduction axis LAST

    # 2x in-buffers + 2x out-buffers + f32 scratch, with headroom.
    need = tr * tc * (4 * itemsize + 4)
    vmem_limit = int(min(max(int(need * 1.5), 16 << 20), 64 << 20))

    out = pl.pallas_call(
        _make_allreduce_kernel(1.0 / W),
        out_shape=jax.ShapeDtypeStruct((rows, tc), grads_stacked.dtype),
        grid_spec=pltpu.PrefetchScalarGridSpec(
            num_scalar_prefetch=0,
            grid=grid,
            in_specs=[
                pl.BlockSpec((pl.Squeezed(), tr, tc), lambda i, w: (w, i, 0)),
            ],
            # Output block index independent of w -> resident accumulator tile,
            # flushed once per row tile.
            out_specs=pl.BlockSpec((tr, tc), lambda i, w: (i, 0)),
            scratch_shapes=[pltpu.VMEM((tr, tc), jnp.float32)],
        ),
        compiler_params=pltpu.CompilerParams(
            dimension_semantics=("parallel", "arbitrary"),
            vmem_limit_bytes=vmem_limit,
        ),
    )(g_view)

    flat = out.reshape(rows * tc)
    if rows * tc != N:
        flat = flat[:N]
    return flat.reshape(R, C)


# --------------------------------- DDP wrapper ------------------------------
class DDP:
    """JAX/Pallas analogue of the PyTorch DDP container."""

    def __init__(self, params, world_size=4, compute_dtype=jnp.float32):
        # "broadcast from src=0": single-process, params are already identical.
        self.params = params
        self.world_size = world_size
        self.compute_dtype = compute_dtype
        self.handles = []  # TODO(synk): no async collective handles on a
        #                    single device; finish_gradient_synchronization
        #                    only blocks on the Pallas results.

        w = params["w"]
        b = params["b"]
        self.d_out, self.d_in = w.shape
        din_p = _round_up(self.d_in, 128)
        dout_p = _round_up(self.d_out, 128)
        # One-time (init) pad + transpose so every forward step avoids the
        # full-weight HBM copy and the per-tile transpose entirely.
        w_pad = jnp.pad(w, ((0, dout_p - self.d_out), (0, din_p - self.d_in)))
        self.w_t = jnp.asarray(w_pad.T, dtype=compute_dtype)          # [Din_p, Dout_p]
        self.b_row = jnp.pad(b, (0, dout_p - self.d_out)
                             ).reshape(1, dout_p).astype(jnp.float32)  # [1, Dout_p]

    def forward(self, x):
        return linear_forward(x, self.w_t, self.b_row, self.d_out,
                              compute_dtype=self.compute_dtype)

    __call__ = forward

    def transform_grad(self, grads_stacked, **kwargs):
        # grad /= world_size ; all_reduce(SUM)  ==  mean over replicas.
        out = allreduce_mean(grads_stacked, **kwargs)
        self.handles.append(out)
        return out

    def finish_gradient_synchronization(self):
        for h in self.handles:
            jax.block_until_ready(h)
        self.handles.clear()


# ----------------------------------- main -----------------------------------
if __name__ == "__main__":
    key = jax.random.PRNGKey(0)
    k_x, k_w, k_b, k_g = jax.random.split(key, 4)

    B, Din, Dout, WORLD = 256, 64, 64, 4

    x = jax.random.normal(k_x, (B, Din), dtype=jnp.float32)
    w = jax.random.normal(k_w, (Dout, Din), dtype=jnp.float32) * 0.05
    b = jax.random.normal(k_b, (Dout,), dtype=jnp.float32) * 0.01

    # compute_dtype=jnp.bfloat16 triples MXU throughput when training tolerates
    # it; kept f32 here so the reference check stays tight.
    ddp = DDP({"w": w, "b": b}, world_size=WORLD, compute_dtype=jnp.float32)

    # Forward pass (delegates to wrapped module's forward, Pallas matmul).
    y = ddp(x)
    jax.block_until_ready(y)

    # Reference check for forward.
    y_ref = x @ w.T + b
    assert jnp.allclose(y, y_ref, atol=1e-4, rtol=1e-4), "forward mismatch"

    # Simulated gradient synchronization (all-reduce mean over world).
    grads_stacked = jax.random.normal(k_g, (WORLD, Dout, Din), dtype=jnp.float32)
    g_sync = ddp.transform_grad(grads_stacked)
    ddp.finish_gradient_synchronization()

    g_ref = jnp.sum(grads_stacked, axis=0) / WORLD
    assert jnp.allclose(g_sync, g_ref, atol=1e-5, rtol=1e-5), "allreduce mismatch"

    print("KERNEL_OK")
</pallas_src>

<mosaic_0001>
module attributes {stable_mosaic.version = 11 : i64} {
  func.func @_linear_kernel(%arg0: i32, %arg1: i32, %arg2: i32, %arg3: memref<256x128xf32, #tpu.memory_space<vmem>>, %arg4: memref<128x128xf32, #tpu.memory_space<vmem>>, %arg5: memref<1x128xf32, #tpu.memory_space<vmem>>, %arg6: memref<256x128xf32, #tpu.memory_space<vmem>>, %arg7: memref<256x128xf32, #tpu.memory_space<vmem>>) attributes {dimension_semantics = [#tpu.dimension_semantics<parallel>, #tpu.dimension_semantics<parallel>, #tpu.dimension_semantics<arbitrary>], iteration_bounds = array<i64: 1, 1, 1>, scalar_prefetch = 0 : i64, scratch_operands = 1 : i64, tpu.core_type = #tpu.core_type<tc>, window_params = [{transform_indices = @transform_0, window_bounds = array<i64: 256, 128>}, {transform_indices = @transform_1, window_bounds = array<i64: 128, 128>}, {transform_indices = @transform_2, window_bounds = array<i64: 1, 128>}, {transform_indices = @transform_3, window_bounds = array<i64: 256, 128>}]} {
    %c0_i32 = arith.constant 0 : i32
    %0 = arith.cmpi eq, %arg2, %c0_i32 : i32
    %1 = arith.extui %0 : i1 to i32
    %c0_i32_0 = arith.constant 0 : i32
    %2 = arith.cmpi ne, %1, %c0_i32_0 : i32
    scf.if %2 {
      %cst_10 = arith.constant 0.000000e+00 : f32
      %12 = vector.broadcast %cst_10 : f32 to vector<256x128xf32>
      %c0_11 = arith.constant 0 : index
      %c0_12 = arith.constant 0 : index
      %13 = vector.load %arg7[%c0_11, %c0_12] : memref<256x128xf32, #tpu.memory_space<vmem>>, vector<256x128xf32>
      tpu.vector_store %arg7[%c0_11, %c0_12], %12 {strides = array<i32>} : memref<256x128xf32, #tpu.memory_space<vmem>>, vector<256x128xf32>,
    } else {
    }
    %c0 = arith.constant 0 : index
    %c0_1 = arith.constant 0 : index
    %3 = vector.load %arg7[%c0, %c0_1] : memref<256x128xf32, #tpu.memory_space<vmem>>, vector<256x128xf32>
    %c0_2 = arith.constant 0 : index
    %c0_3 = arith.constant 0 : index
    %4 = vector.load %arg3[%c0_2, %c0_3] : memref<256x128xf32, #tpu.memory_space<vmem>>, vector<256x128xf32>
    %c0_4 = arith.constant 0 : index
    %c0_5 = arith.constant 0 : index
    %5 = vector.load %arg4[%c0_4, %c0_5] : memref<128x128xf32, #tpu.memory_space<vmem>>, vector<128x128xf32>
    %cst = arith.constant dense<0.000000e+00> : vector<256x128xf32>
    %6 = tpu.matmul %4, %5, %cst {dimension_numbers = #tpu.dot_dimension_numbers<[1], [0], [0], [1], [0, 0, 1, 1], [], []>} : vector<256x128xf32>, vector<128x128xf32>, vector<256x128xf32> -> vector<256x128xf32>
    %7 = arith.addf %3, %6 : vector<256x128xf32>
    %c0_6 = arith.constant 0 : index
    %c0_7 = arith.constant 0 : index
    %8 = vector.load %arg7[%c0_6, %c0_7] : memref<256x128xf32, #tpu.memory_space<vmem>>, vector<256x128xf32>
    tpu.vector_store %arg7[%c0_6, %c0_7], %7 {strides = array<i32>} : memref<256x128xf32, #tpu.memory_space<vmem>>, vector<256x128xf32>,
    %c0_i32_8 = arith.constant 0 : i32
    %9 = arith.cmpi eq, %arg2, %c0_i32_8 : i32
    %10 = arith.extui %9 : i1 to i32
    %c0_i32_9 = arith.constant 0 : i32
    %11 = arith.cmpi ne, %10, %c0_i32_9 : i32
    scf.if %11 {
      %c0_10 = arith.constant 0 : index
      %c0_11 = arith.constant 0 : index
      %12 = vector.load %arg7[%c0_10, %c0_11] : memref<256x128xf32, #tpu.memory_space<vmem>>, vector<256x128xf32>
      %c0_12 = arith.constant 0 : index
      %c0_13 = arith.constant 0 : index
      %13 = vector.load %arg5[%c0_12, %c0_13] : memref<1x128xf32, #tpu.memory_space<vmem>>, vector<1x128xf32>
      %14 = vector.broadcast %13 : vector<1x128xf32> to vector<256x128xf32>
      %15 = arith.addf %12, %14 : vector<256x128xf32>
      %c0_14 = arith.constant 0 : index
      %c0_15 = arith.constant 0 : index
      %16 = vector.load %arg6[%c0_14, %c0_15] : memref<256x128xf32, #tpu.memory_space<vmem>>, vector<256x128xf32>
      tpu.vector_store %arg6[%c0_14, %c0_15], %15 {strides = array<i32>} : memref<256x128xf32, #tpu.memory_space<vmem>>, vector<256x128xf32>,
    } else {
    }
    return
  }
  func.func @transform_0(%arg0: i32, %arg1: i32, %arg2: i32) -> (i32, i32) {
    %c0_i32 = arith.constant 0 : i32
    return %arg0, %arg2 : i32, i32
  }
  func.func @transform_1(%arg0: i32, %arg1: i32, %arg2: i32) -> (i32, i32) {
    %c0_i32 = arith.constant 0 : i32
    return %arg2, %arg1 : i32, i32
  }
  func.func @transform_2(%arg0: i32, %arg1: i32, %arg2: i32) -> (i32, i32) {
    %c0_i32 = arith.constant 0 : i32
    %c0_i32_0 = arith.constant 0 : i32
    return %c0_i32, %arg1 : i32, i32
  }
  func.func @transform_3(%arg0: i32, %arg1: i32, %arg2: i32) -> (i32, i32) {
    %c0_i32 = arith.constant 0 : i32
    return %arg0, %arg1 : i32, i32
  }
}

</mosaic_0001>

<bundles_post_ra>
// kernel: tpu_custom_call.1
= control target key start
LH: loop header
LB: loop body
LE: loop exit
PB: predicated region body
PF: predicated region fallthrough
CT: control target
= control target key end

     0   :  { %8 = vsyncpa [#allocation4], 0  ;;  %s884_s0 = inlined_call_operand.hbm [shape: f32[256,128], index: 0, kind: input, shape index: {}]   ;;  %s885_s1 = inlined_call_operand.hbm [shape: f32[128,128], index: 1, kind: input, shape index: {}]   ;;  %s886_s2 = inlined_call_operand.vmem [shape: f32[1,128], index: 2, kind: input, shape index: {}]   ;;  %s887_s3 = inlined_call_operand.hbm [shape: f32[256,128], index: 3, kind: output, shape index: {}]  }
   0x1   :  { %9 = vsyncpa [#allocation7], 0 }
   0x2   :  { %10 = vsyncpa [#allocation5], 0  ;;  %s804_s12 = smov [#allocation3]  }
   0x3   :  { %s16_s13 = sshll.u32 %s804_s12, 4  ;;  %s17_s13 = int_to_ptr.vmem [resolvable:$true] %s16_s13 }
   0x4   :  { %s746_s14 = scalar_lea.vmem %s17_s13, 4096  ;;  %p751_p1 = scmp.lt.s32.totalorder %s17_s13, %s17_s13 }
   0x5   :  { %p747_p0 = scmp.ne.s32.totalorder %s17_s13, %s746_s14  ;;  %p752_p2 = scmp.lt.s32.totalorder %s746_s14, %s746_s14 }
   0x7   :  { %p753_p3 = por %p752_p2, %p751_p1 }
   0x9   :  { %p754_p4 = pnand %p753_p3, %p747_p0 }
   0xb   :  { %757 = shalt.err (!%p754_p4)
}
   0xc   :  { %s805_s15 = smov 128   ;;  %s806_s16 = smov 8  }
   0xd   :  { %22 = dma.hbm_to_vmem [thread:$0]  %s884_s0, 4096, %s17_s13, [#allocation4], %s805_s15, %s805_s15, %s806_s16  }
   0xe   :  { %s807_s19 = smov [#allocation6]  }
   0xf   :  { %s28_s20 = sshll.u32 %s807_s19, 4  ;;  %s29_s20 = int_to_ptr.vmem [resolvable:$true] %s28_s20 }
  0x10   :  { %s766_s21 = scalar_lea.vmem %s29_s20, 2048  ;;  %p771_p6 = scmp.lt.s32.totalorder %s29_s20, %s29_s20 }
  0x11   :  { %p767_p5 = scmp.ne.s32.totalorder %s29_s20, %s766_s21  ;;  %p772_p7 = scmp.lt.s32.totalorder %s766_s21, %s766_s21 }
  0x13   :  { %p773_p8 = por %p772_p7, %p771_p6 }
  0x15   :  { %p774_p9 = pnand %p773_p8, %p767_p5 }
  0x17   :  { %777 = shalt.err (!%p774_p9)
}
  0x18   :  { %34 = dma.hbm_to_vmem [thread:$0]  %s885_s1, 2048, %s29_s20, [#allocation7], %s805_s15, %s805_s15, %s806_s16  }
  0x19   :  { %798 = dma.done.wait [#allocation4], 4096  }
  0x1a   :  { %799 = vsyncadd [#allocation4], 4294963200 }
  0x1b   :  { %800 = dma.done.wait [#allocation7], 2048  }
  0x1c   :  { %801 = vsyncadd [#allocation7], 4294965248  ;;  %v158_v0 = vld [vmem:[#allocation6 + $0x78] sm:$0xff]  ;;  %v157_v1 = vld [vmem:[#allocation6 + $0x70] sm:$0xff] }
  0x1d   :  { %621 = vmatprep.subr.mxu0 %v158_v0  ;;  %701 = vmatprep.subr.mxu1 %v158_v0  ;;  %v156_v2 = vld [vmem:[#allocation6 + $0x68] sm:$0xff]  ;;  %v155_v3 = vld [vmem:[#allocation6 + $0x60] sm:$0xff]  ;;  %v154_v4 = vld [vmem:[#allocation6 + $0x58] sm:$0xff] }
  0x1e   :  { %622 = vmatpush3.msra.mxu0 %v158_v0  ;;  %717 = vmatpush3.msra.mxu1 %v158_v0  ;;  %v153_v5 = vld [vmem:[#allocation6 + $0x50] sm:$0xff]  ;;  %v152_v6 = vld [vmem:[#allocation6 + $0x48] sm:$0xff]  ;;  %v151_v7 = vld [vmem:[#allocation6 + $0x40] sm:$0xff] }
  0x1f   :  { %623 = vmatprep.subr.mxu0 %v157_v1  ;;  %702 = vmatprep.subr.mxu1 %v157_v1  ;;  %v150_v8 = vld [vmem:[#allocation6 + $0x38] sm:$0xff]  ;;  %v149_v9 = vld [vmem:[#allocation6 + $0x30] sm:$0xff]  ;;  %v148_v10 = vld [vmem:[#allocation6 + $0x28] sm:$0xff] }
  0x20   :  { %624 = vmatpush3.msra.mxu0 %v157_v1  ;;  %718 = vmatpush3.msra.mxu1 %v157_v1  ;;  %v147_v11 = vld [vmem:[#allocation6 + $0x20] sm:$0xff]  ;;  %v146_v12 = vld [vmem:[#allocation6 + $0x18] sm:$0xff]  ;;  %v145_v13 = vld [vmem:[#allocation6 + $0x10] sm:$0xff] }
  0x21   :  { %625 = vmatprep.subr.mxu0 %v156_v2  ;;  %703 = vmatprep.subr.mxu1 %v156_v2  ;;  %v144_v14 = vld [vmem:[#allocation6 + $0x8] sm:$0xff]  ;;  %v143_v15 = vld [vmem:[#allocation6] sm:$0xff]  ;;  %v113_v20 = vld [vmem:[#allocation3 + $0x10] sm:$0xff] }
  0x22   :  { %626 = vmatpush3.msra.mxu0 %v156_v2  ;;  %719 = vmatpush3.msra.mxu1 %v156_v2  ;;  %v111_v16 = vld [vmem:[#allocation3] sm:$0xff]  ;;  %v112_v18 = vld [vmem:[#allocation3 + $0x8] sm:$0xff]  ;;  %v129_v21 = vld [vmem:[#allocation3 + $0x90] sm:$0xff] }
  0x23   :  { %627 = vmatprep.subr.mxu0 %v155_v3  ;;  %704 = vmatprep.subr.mxu1 %v155_v3  ;;  %v127_v17 = vld [vmem:[#allocation3 + $0x80] sm:$0xff]  ;;  %v128_v19 = vld [vmem:[#allocation3 + $0x88] sm:$0xff]  ;;  %v114_v22 = vld [vmem:[#allocation3 + $0x18] sm:$0xff] }
  0x24   :  { %628 = vmatpush3.msra.mxu0 %v155_v3  ;;  %720 = vmatpush3.msra.mxu1 %v155_v3  ;;  %v130_v23 = vld [vmem:[#allocation3 + $0x98] sm:$0xff]  ;;  %v115_v24 = vld [vmem:[#allocation3 + $0x20] sm:$0xff]  ;;  %v116_v26 = vld [vmem:[#allocation3 + $0x28] sm:$0xff] }
  0x25   :  { %629 = vmatprep.subr.mxu0 %v154_v4  ;;  %705 = vmatprep.subr.mxu1 %v154_v4  ;;  %v131_v25 = vld [vmem:[#allocation3 + $0xa0] sm:$0xff]  ;;  %v132_v27 = vld [vmem:[#allocation3 + $0xa8] sm:$0xff]  ;;  %v117_v28 = vld [vmem:[#allocation3 + $0x30] sm:$0xff] }
  0x26   :  { %630 = vmatpush3.msra.mxu0 %v154_v4  ;;  %721 = vmatpush3.msra.mxu1 %v154_v4  ;;  %v133_v29 = vld [vmem:[#allocation3 + $0xb0] sm:$0xff]  ;;  %v118_v30 = vld [vmem:[#allocation3 + $0x38] sm:$0xff]  ;;  %v119_v32 = vld [vmem:[#allocation3 + $0x40] sm:$0xff] }
  0x27   :  { %631 = vmatprep.subr.mxu0 %v153_v5  ;;  %706 = vmatprep.subr.mxu1 %v153_v5  ;;  %v134_v31 = vld [vmem:[#allocation3 + $0xb8] sm:$0xff]  ;;  %v135_v33 = vld [vmem:[#allocation3 + $0xc0] sm:$0xff]  ;;  %v120_v34 = vld [vmem:[#allocation3 + $0x48] sm:$0xff] }
  0x28   :  { %632 = vmatpush3.msra.mxu0 %v153_v5  ;;  %722 = vmatpush3.msra.mxu1 %v153_v5  ;;  %v136_v35 = vld [vmem:[#allocation3 + $0xc8] sm:$0xff]  ;;  %v121_v36 = vld [vmem:[#allocation3 + $0x50] sm:$0xff]  ;;  %v122_v38 = vld [vmem:[#allocation3 + $0x58] sm:$0xff] }
  0x29   :  { %633 = vmatprep.subr.mxu0 %v152_v6  ;;  %707 = vmatprep.subr.mxu1 %v152_v6  ;;  %v137_v37 = vld [vmem:[#allocation3 + $0xd0] sm:$0xff]  ;;  %v138_v39 = vld [vmem:[#allocation3 + $0xd8] sm:$0xff]  ;;  %v123_v40 = vld [vmem:[#allocation3 + $0x60] sm:$0xff] }
  0x2a   :  { %634 = vmatpush3.msra.mxu0 %v152_v6  ;;  %723 = vmatpush3.msra.mxu1 %v152_v6  ;;  %v139_v41 = vld [vmem:[#allocation3 + $0xe0] sm:$0xff]  ;;  %v124_v42 = vld [vmem:[#allocation3 + $0x68] sm:$0xff]  ;;  %v125_v44 = vld [vmem:[#allocation3 + $0x70] sm:$0xff] }
  0x2b   :  { %635 = vmatprep.subr.mxu0 %v151_v7  ;;  %708 = vmatprep.subr.mxu1 %v151_v7  ;;  %v140_v43 = vld [vmem:[#allocation3 + $0xe8] sm:$0xff]  ;;  %v141_v45 = vld [vmem:[#allocation3 + $0xf0] sm:$0xff]  ;;  %v126_v46 = vld [vmem:[#allocation3 + $0x78] sm:$0xff] }
  0x2c   :  { %636 = vmatpush3.msra.mxu0 %v151_v7  ;;  %724 = vmatpush3.msra.mxu1 %v151_v7  ;;  %v142_v47 = vld [vmem:[#allocation3 + $0xf8] sm:$0xff]  ;;  %v844_v48 = vld [vmem:[%s886_s2] ss:$0 sm:$0xff]  ;;  %s808_s2 = smov [#allocation8]  }
  0x2d   :  { %637 = vmatprep.subr.mxu0 %v150_v8  ;;  %709 = vmatprep.subr.mxu1 %v150_v8  ;;  %s559_s24 = sshll.u32 %s808_s2, 4  ;;  %s560_s24 = int_to_ptr.vmem [resolvable:$true] %s559_s24 }
  0x2e   :  { %638 = vmatpush3.msra.mxu0 %v150_v8  ;;  %725 = vmatpush3.msra.mxu1 %v150_v8  ;;  %s778_s25 = scalar_lea.vmem %s560_s24, 4096  ;;  %p783_p11 = scmp.lt.s32.totalorder %s560_s24, %s560_s24 }
  0x2f   :  { %639 = vmatprep.subr.mxu0 %v149_v9  ;;  %710 = vmatprep.subr.mxu1 %v149_v9  ;;  %p779_p10 = scmp.ne.s32.totalorder %s560_s24, %s778_s25  ;;  %p784_p12 = scmp.lt.s32.totalorder %s778_s25, %s778_s25 }
  0x30   :  { %640 = vmatpush3.msra.mxu0 %v149_v9  ;;  %726 = vmatpush3.msra.mxu1 %v149_v9 }
  0x31   :  { %641 = vmatprep.subr.mxu0 %v148_v10  ;;  %711 = vmatprep.subr.mxu1 %v148_v10  ;;  %p785_p13 = por %p784_p12, %p783_p11 }
  0x32   :  { %642 = vmatpush3.msra.mxu0 %v148_v10  ;;  %727 = vmatpush3.msra.mxu1 %v148_v10 }
  0x33   :  { %643 = vmatprep.subr.mxu0 %v147_v11  ;;  %712 = vmatprep.subr.mxu1 %v147_v11  ;;  %p786_p0 = pnand %p785_p13, %p779_p10 }
  0x34   :  { %644 = vmatpush3.msra.mxu0 %v147_v11  ;;  %728 = vmatpush3.msra.mxu1 %v147_v11 }
  0x35   :  { %645 = vmatprep.subr.mxu0 %v146_v12  ;;  %713 = vmatprep.subr.mxu1 %v146_v12 }
  0x36   :  { %646 = vmatpush3.msra.mxu0 %v146_v12  ;;  %729 = vmatpush3.msra.mxu1 %v146_v12 }
  0x37   :  { %647 = vmatprep.subr.mxu0 %v145_v13  ;;  %714 = vmatprep.subr.mxu1 %v145_v13 }
  0x38   :  { %648 = vmatpush3.msra.mxu0 %v145_v13  ;;  %730 = vmatpush3.msra.mxu1 %v145_v13 }
  0x39   :  { %649 = vmatprep.subr.mxu0 %v144_v14  ;;  %715 = vmatprep.subr.mxu1 %v144_v14 }
  0x3a   :  { %650 = vmatpush3.msra.mxu0 %v144_v14  ;;  %731 = vmatpush3.msra.mxu1 %v144_v14 }
  0x3b   :  { %651 = vmatprep.subr.mxu0 %v143_v15  ;;  %716 = vmatprep.subr.mxu1 %v143_v15 }
  0x3c   :  { %652 = vmatpush3.msra.mxu0 %v143_v15  ;;  %732 = vmatpush3.msra.mxu1 %v143_v15 }
  0x3d   :  { %653 = vmatprep.mubr.f32.mxu0 %v111_v16  ;;  %677 = vmatprep.mubr.f32.mxu1 %v127_v17 }
  0x3e   :  { %654 = vmatmul.mubr.f32.vlgmr.msra.gmra.mxu0 %v112_v18  ;;  %678 = vmatmul.mubr.f32.vlgmr.msra.gmra.mxu1 %v128_v19 }
  0x3f   :  { %656 = vmatprep.mubr.f32.mxu0 %v113_v20  ;;  %680 = vmatprep.mubr.f32.mxu1 %v129_v21 }
  0x42   :  { %657 = vmatmul.mubr.f32.gmra.mxu0 %v114_v22  ;;  %681 = vmatmul.mubr.f32.gmra.mxu1 %v130_v23 }
  0x43   :  { %659 = vmatprep.mubr.f32.mxu0 %v115_v24  ;;  %683 = vmatprep.mubr.f32.mxu1 %v131_v25 }
  0x46   :  { %660 = vmatmul.mubr.f32.gmra.mxu0 %v116_v26  ;;  %684 = vmatmul.mubr.f32.gmra.mxu1 %v132_v27 }
  0x47   :  { %662 = vmatprep.mubr.f32.mxu0 %v117_v28  ;;  %686 = vmatprep.mubr.f32.mxu1 %v133_v29 }
  0x4a   :  { %663 = vmatmul.mubr.f32.gmra.mxu0 %v118_v30  ;;  %687 = vmatmul.mubr.f32.gmra.mxu1 %v134_v31 }
  0x4b   :  { %665 = vmatprep.mubr.f32.mxu0 %v119_v32  ;;  %689 = vmatprep.mubr.f32.mxu1 %v135_v33 }
  0x4e   :  { %666 = vmatmul.mubr.f32.gmra.mxu0 %v120_v34  ;;  %690 = vmatmul.mubr.f32.gmra.mxu1 %v136_v35 }
  0x4f   :  { %668 = vmatprep.mubr.f32.mxu0 %v121_v36  ;;  %692 = vmatprep.mubr.f32.mxu1 %v137_v37 }
  0x52   :  { %669 = vmatmul.mubr.f32.gmra.mxu0 %v122_v38  ;;  %693 = vmatmul.mubr.f32.gmra.mxu1 %v138_v39 }
  0x53   :  { %671 = vmatprep.mubr.f32.mxu0 %v123_v40  ;;  %695 = vmatprep.mubr.f32.mxu1 %v139_v41 }
  0x56   :  { %672 = vmatmul.mubr.f32.gmra.mxu0 %v124_v42  ;;  %696 = vmatmul.mubr.f32.gmra.mxu1 %v140_v43 }
  0x57   :  { %674 = vmatprep.mubr.f32.mxu0 %v125_v44  ;;  %698 = vmatprep.mubr.f32.mxu1 %v141_v45 }
  0x5a   :  { %675 = vmatmul.mubr.f32.gmra.mxu0 %v126_v46  ;;  %699 = vmatmul.mubr.f32.gmra.mxu1 %v142_v47 }
  0xfe   :  { %v655_v49 = vpop.f32.mrf.mxu0  ;;  %v679_v50 = vpop.f32.mrf.mxu1 }
  0xff   :  { %v491_v51 = vadd.f32 %v655_v49, %v844_v48  ;;  %v507_v52 = vadd.f32 %v679_v50, %v844_v48 }
 0x100   :  { %v225_v53 = vpop.f32.mrf.mxu0  ;;  %v305_v54 = vpop.f32.mrf.mxu1 }
 0x101   :  { %523 = vst [vmem:[#allocation8 + $0x8] sm:$0xff] %v491_v51  ;;  %539 = vst [vmem:[#allocation8 + $0x88] sm:$0xff] %v507_v52  ;;  %v490_v55 = vadd.f32 %v844_v48, %v225_v53  ;;  %v506_v56 = vadd.f32 %v844_v48, %v305_v54 }
 0x102   :  { %v658_v57 = vpop.f32.mrf.mxu0  ;;  %v682_v58 = vpop.f32.mrf.mxu1 }
 0x103   :  { %522 = vst [vmem:[#allocation8] sm:$0xff] %v490_v55  ;;  %538 = vst [vmem:[#allocation8 + $0x80] sm:$0xff] %v506_v56  ;;  %v493_v59 = vadd.f32 %v658_v57, %v844_v48  ;;  %v509_v60 = vadd.f32 %v682_v58, %v844_v48 }
 0x104   :  { %v235_v61 = vpop.f32.mrf.mxu0  ;;  %v315_v62 = vpop.f32.mrf.mxu1 }
 0x105   :  { %525 = vst [vmem:[#allocation8 + $0x18] sm:$0xff] %v493_v59  ;;  %541 = vst [vmem:[#allocation8 + $0x98] sm:$0xff] %v509_v60  ;;  %v492_v63 = vadd.f32 %v844_v48, %v235_v61  ;;  %v508_v0 = vadd.f32 %v844_v48, %v315_v62 }
 0x106   :  { %v661_v1 = vpop.f32.mrf.mxu0  ;;  %v685_v2 = vpop.f32.mrf.mxu1 }
 0x107   :  { %524 = vst [vmem:[#allocation8 + $0x10] sm:$0xff] %v492_v63  ;;  %540 = vst [vmem:[#allocation8 + $0x90] sm:$0xff] %v508_v0  ;;  %v495_v3 = vadd.f32 %v661_v1, %v844_v48  ;;  %v511_v4 = vadd.f32 %v685_v2, %v844_v48 }
 0x108   :  { %v245_v5 = vpop.f32.mrf.mxu0  ;;  %v325_v6 = vpop.f32.mrf.mxu1 }
 0x109   :  { %527 = vst [vmem:[#allocation8 + $0x28] sm:$0xff] %v495_v3  ;;  %543 = vst [vmem:[#allocation8 + $0xa8] sm:$0xff] %v511_v4  ;;  %v494_v7 = vadd.f32 %v844_v48, %v245_v5  ;;  %v510_v8 = vadd.f32 %v844_v48, %v325_v6 }
 0x10a   :  { %v664_v9 = vpop.f32.mrf.mxu0  ;;  %v688_v10 = vpop.f32.mrf.mxu1 }
 0x10b   :  { %526 = vst [vmem:[#allocation8 + $0x20] sm:$0xff] %v494_v7  ;;  %542 = vst [vmem:[#allocation8 + $0xa0] sm:$0xff] %v510_v8  ;;  %v497_v11 = vadd.f32 %v664_v9, %v844_v48  ;;  %v513_v12 = vadd.f32 %v688_v10, %v844_v48 }
 0x10c   :  { %v255_v13 = vpop.f32.mrf.mxu0  ;;  %v335_v14 = vpop.f32.mrf.mxu1 }
 0x10d   :  { %529 = vst [vmem:[#allocation8 + $0x38] sm:$0xff] %v497_v11  ;;  %545 = vst [vmem:[#allocation8 + $0xb8] sm:$0xff] %v513_v12  ;;  %v496_v15 = vadd.f32 %v844_v48, %v255_v13  ;;  %v512_v16 = vadd.f32 %v844_v48, %v335_v14 }
 0x10e   :  { %v667_v17 = vpop.f32.mrf.mxu0  ;;  %v691_v18 = vpop.f32.mrf.mxu1 }
 0x10f   :  { %528 = vst [vmem:[#allocation8 + $0x30] sm:$0xff] %v496_v15  ;;  %544 = vst [vmem:[#allocation8 + $0xb0] sm:$0xff] %v512_v16  ;;  %v499_v19 = vadd.f32 %v667_v17, %v844_v48  ;;  %v515_v20 = vadd.f32 %v691_v18, %v844_v48 }
 0x110   :  { %v265_v21 = vpop.f32.mrf.mxu0  ;;  %v345_v22 = vpop.f32.mrf.mxu1 }
 0x111   :  { %531 = vst [vmem:[#allocation8 + $0x48] sm:$0xff] %v499_v19  ;;  %547 = vst [vmem:[#allocation8 + $0xc8] sm:$0xff] %v515_v20  ;;  %v498_v23 = vadd.f32 %v844_v48, %v265_v21  ;;  %v514_v24 = vadd.f32 %v844_v48, %v345_v22 }
 0x112   :  { %v670_v25 = vpop.f32.mrf.mxu0  ;;  %v694_v26 = vpop.f32.mrf.mxu1 }
 0x113   :  { %530 = vst [vmem:[#allocation8 + $0x40] sm:$0xff] %v498_v23  ;;  %546 = vst [vmem:[#allocation8 + $0xc0] sm:$0xff] %v514_v24  ;;  %v501_v27 = vadd.f32 %v670_v25, %v844_v48  ;;  %v517_v28 = vadd.f32 %v694_v26, %v844_v48 }
 0x114   :  { %v275_v29 = vpop.f32.mrf.mxu0  ;;  %v355_v30 = vpop.f32.mrf.mxu1 }
 0x115   :  { %533 = vst [vmem:[#allocation8 + $0x58] sm:$0xff] %v501_v27  ;;  %549 = vst [vmem:[#allocation8 + $0xd8] sm:$0xff] %v517_v28  ;;  %v500_v31 = vadd.f32 %v844_v48, %v275_v29  ;;  %v516_v32 = vadd.f32 %v844_v48, %v355_v30 }
 0x116   :  { %v673_v33 = vpop.f32.mrf.mxu0  ;;  %v697_v34 = vpop.f32.mrf.mxu1 }
 0x117   :  { %532 = vst [vmem:[#allocation8 + $0x50] sm:$0xff] %v500_v31  ;;  %548 = vst [vmem:[#allocation8 + $0xd0] sm:$0xff] %v516_v32  ;;  %v503_v35 = vadd.f32 %v673_v33, %v844_v48  ;;  %v519_v36 = vadd.f32 %v697_v34, %v844_v48 }
 0x118   :  { %v285_v37 = vpop.f32.mrf.mxu0  ;;  %v365_v38 = vpop.f32.mrf.mxu1 }
 0x119   :  { %535 = vst [vmem:[#allocation8 + $0x68] sm:$0xff] %v503_v35  ;;  %551 = vst [vmem:[#allocation8 + $0xe8] sm:$0xff] %v519_v36  ;;  %v502_v39 = vadd.f32 %v844_v48, %v285_v37  ;;  %v518_v40 = vadd.f32 %v844_v48, %v365_v38 }
 0x11a   :  { %v676_v41 = vpop.f32.mrf.mxu0  ;;  %v700_v42 = vpop.f32.mrf.mxu1 }
 0x11b   :  { %534 = vst [vmem:[#allocation8 + $0x60] sm:$0xff] %v502_v39  ;;  %550 = vst [vmem:[#allocation8 + $0xe0] sm:$0xff] %v518_v40  ;;  %v505_v43 = vadd.f32 %v676_v41, %v844_v48  ;;  %v521_v44 = vadd.f32 %v700_v42, %v844_v48 }
 0x11c   :  { %v295_v45 = vpop.f32.mrf.mxu0  ;;  %v375_v46 = vpop.f32.mrf.mxu1 }
 0x11d   :  { %537 = vst [vmem:[#allocation8 + $0x78] sm:$0xff] %v505_v43  ;;  %553 = vst [vmem:[#allocation8 + $0xf8] sm:$0xff] %v521_v44  ;;  %v504_v47 = vadd.f32 %v844_v48, %v295_v45  ;;  %v520_v49 = vadd.f32 %v844_v48, %v375_v46 }
 0x11f   :  { %536 = vst [vmem:[#allocation8 + $0x70] sm:$0xff] %v504_v47  ;;  %552 = vst [vmem:[#allocation8 + $0xf0] sm:$0xff] %v520_v49 }
 0x120   :  { %789 = shalt.err (!%p786_p0)
}
 0x121   :  { %565 = dma.vmem_to_hbm [thread:$0]  %s560_s24, 4096, %s887_s3, [#allocation5], %s805_s15, %s805_s15, %s806_s16  }
 0x122   :  { %802 = dma.done.wait [#allocation5], 4096  }
 0x123   :  { %803 = vsyncadd [#allocation5], 4294963200 }
 0x124   :  { %569 = vsyncpa [#allocation4], 1 }
 0x125   :  { %570 = vsyncpa [#allocation7], 1 }
 0x126   :  { %571 = vsyncpa [#allocation5], 1 }

</bundles_post_ra>
